<compile_context>
chip_gen: v6e
topology: v6e:2x2x1
jax: 0.10.0
libtpu: 0.0.40
codegen_flags: <defaults>
</compile_context>

<pallas_src>
import math

import jax
import jax.numpy as jnp
from jax.experimental import pallas as pl
from jax.experimental.pallas import tpu as pltpu

IN, H1, H2, OUT = 784, 500, 84, 10
IN_P, H1_P, H2_P = 896, 512, 128          # lane-aligned (multiples of 128)


def _round_up(x, m):
    return (x + m - 1) // m * m


def _mlp_kernel(x_ref, w1_ref, b1_ref, w2_ref, b2_ref, w3_ref, b3_ref, o_ref):
    # fc1 + relu  (bf16 MXU inputs, f32 accumulation; elementwise math in f32)
    h1 = jnp.dot(x_ref[...], w1_ref[...], preferred_element_type=jnp.float32)
    h1 = jnp.maximum(h1 + b1_ref[...], 0.0)
    # fc2 + relu
    h2 = jnp.dot(h1.astype(jnp.bfloat16), w2_ref[...],
                 preferred_element_type=jnp.float32)
    h2 = jnp.maximum(h2 + b2_ref[...], 0.0)
    # fc3 (output kept at 10 real columns -> log_softmax sees no padding)
    logits = jnp.dot(h2.astype(jnp.bfloat16), w3_ref[...],
                     preferred_element_type=jnp.float32)
    logits = logits + b3_ref[...]
    # numerically stable log_softmax over last axis (PyTorch default dim=1)
    m = jnp.max(logits, axis=-1, keepdims=True)
    shifted = logits - m
    lse = jnp.log(jnp.sum(jnp.exp(shifted), axis=-1, keepdims=True))
    o_ref[...] = shifted - lse


def _pack_params(params):
    """Zero-pad weights/biases to lane multiples; cast matmul operands to bf16."""
    w1 = jnp.zeros((IN_P, H1_P), jnp.float32).at[:IN, :H1].set(params["w1"])
    b1 = jnp.zeros((1, H1_P), jnp.float32).at[:, :H1].set(params["b1"])
    w2 = jnp.zeros((H1_P, H2_P), jnp.float32).at[:H1, :H2].set(params["w2"])
    b2 = jnp.zeros((1, H2_P), jnp.float32).at[:, :H2].set(params["b2"])
    w3 = jnp.zeros((H2_P, OUT), jnp.float32).at[:H2, :].set(params["w3"])
    b3 = params["b3"].reshape(1, OUT).astype(jnp.float32)
    return (w1.astype(jnp.bfloat16), b1,
            w2.astype(jnp.bfloat16), b2,
            w3.astype(jnp.bfloat16), b3)


def net_forward(x, params, *, block_b=256):
    """x: (B, 784) float32. params: dict of w1,b1,w2,b2,w3,b3 (w as (in, out))."""
    B = x.shape[0]
    tb = min(block_b, _round_up(B, 8))     # batch tile (>=8, sweepable up to 2048)
    Bp = _round_up(B, tb)                  # padded batch (tail rows are zeros)
    grid = (Bp // tb,)

    # Pad batch and K dim with zeros, cast MXU input to bf16.
    xp = jnp.zeros((Bp, IN_P), jnp.float32).at[:B, :IN].set(x).astype(jnp.bfloat16)
    w1, b1, w2, b2, w3, b3 = _pack_params(params)

    def const(shape):  # resident block: same block index every grid step
        return pl.BlockSpec(shape, lambda i: (0, 0))

    flops = 2 * Bp * (IN_P * H1_P + H1_P * H2_P + H2_P * OUT)
    bytes_accessed = (Bp * IN_P * 2 + Bp * OUT * 4
                      + (IN_P * H1_P + H1_P * H2_P + H2_P * OUT) * 2
                      + (H1_P + H2_P + OUT) * 4)

    out = pl.pallas_call(
        _mlp_kernel,
        out_shape=jax.ShapeDtypeStruct((Bp, OUT), jnp.float32),
        grid=grid,
        in_specs=[
            pl.BlockSpec((tb, IN_P), lambda i: (i, 0)),   # x: tiled over batch
            const((IN_P, H1_P)), const((1, H1_P)),        # fc1 (resident)
            const((H1_P, H2_P)), const((1, H2_P)),        # fc2 (resident)
            const((H2_P, OUT)), const((1, OUT)),          # fc3 (resident)
        ],
        out_specs=pl.BlockSpec((tb, OUT), lambda i: (i, 0)),
        compiler_params=pltpu.CompilerParams(
            dimension_semantics=("parallel",)),
        cost_estimate=pl.CostEstimate(
            flops=flops,
            transcendentals=Bp * (OUT + 1),
            bytes_accessed=bytes_accessed),
    )(xp, w1, b1, w2, b2, w3, b3)
    return out[:B]


def init_params(key):
    """Deterministic init mimicking nn.Linear default (uniform +/- 1/sqrt(fan_in))."""
    def linear(key, fan_in, fan_out):
        kw, kb = jax.random.split(key)
        bound = 1.0 / math.sqrt(fan_in)
        w = jax.random.uniform(kw, (fan_in, fan_out), jnp.float32, -bound, bound)
        b = jax.random.uniform(kb, (1, fan_out), jnp.float32, -bound, bound)
        return w, b

    k1, k2, k3 = jax.random.split(key, 3)
    w1, b1 = linear(k1, 784, 500)
    w2, b2 = linear(k2, 500, 84)
    w3, b3 = linear(k3, 84, 10)
    return {"w1": w1, "b1": b1, "w2": w2, "b2": b2, "w3": w3, "b3": b3}


def _reference_f32(x, p):
    h1 = jax.nn.relu(x @ p["w1"] + p["b1"])
    h2 = jax.nn.relu(h1 @ p["w2"] + p["b2"])
    return jax.nn.log_softmax(h2 @ p["w3"] + p["b3"], axis=-1)


def _reference_bf16(x, p):
    # Same mixed precision as the kernel (bf16 matmul operands, f32 accumulate).
    mm = lambda a, w: jnp.dot(a.astype(jnp.bfloat16), w.astype(jnp.bfloat16),
                              preferred_element_type=jnp.float32)
    h1 = jax.nn.relu(mm(x, p["w1"]) + p["b1"])
    h2 = jax.nn.relu(mm(h1, p["w2"]) + p["b2"])
    return jax.nn.log_softmax(mm(h2, p["w3"]) + p["b3"], axis=-1)


if __name__ == "__main__":
    key = jax.random.PRNGKey(0)
    kx, kp = jax.random.split(key)
    B = 8
    x = jax.random.normal(kx, (B, 784), jnp.float32)
    params = init_params(kp)

    out = net_forward(x, params)
    jax.block_until_ready(out)

    assert out.shape == (B, 10)
    # Tight check vs a mixed-precision-matched reference.
    ref_bf16 = _reference_bf16(x, params)
    assert jnp.allclose(out, ref_bf16, atol=1e-3, rtol=1e-3)
    # Looser sanity check vs the pure-f32 reference.
    ref_f32 = _reference_f32(x, params)
    assert jnp.allclose(out, ref_f32, atol=5e-2, rtol=5e-2)
    print("KERNEL_OK")
</pallas_src>

<mosaic_0001>
module attributes {stable_mosaic.version = 11 : i64} {
  func.func @_mlp_kernel(%arg0: i32, %arg1: memref<8x896xbf16, #tpu.memory_space<vmem>>, %arg2: memref<896x512xbf16, #tpu.memory_space<vmem>>, %arg3: memref<1x512xf32, #tpu.memory_space<vmem>>, %arg4: memref<512x128xbf16, #tpu.memory_space<vmem>>, %arg5: memref<1x128xf32, #tpu.memory_space<vmem>>, %arg6: memref<128x10xbf16, #tpu.memory_space<vmem>>, %arg7: memref<1x10xf32, #tpu.memory_space<vmem>>, %arg8: memref<8x10xf32, #tpu.memory_space<vmem>>) attributes {dimension_semantics = [#tpu.dimension_semantics<parallel>], iteration_bounds = array<i64: 1>, scalar_prefetch = 0 : i64, scratch_operands = 0 : i64, tpu.core_type = #tpu.core_type<tc>, window_params = [{transform_indices = @transform_0, window_bounds = array<i64: 8, 896>}, {pipeline_mode = #tpu.pipeline_mode<synchronous>, transform_indices = @transform_1, window_bounds = array<i64: 896, 512>}, {pipeline_mode = #tpu.pipeline_mode<synchronous>, transform_indices = @transform_2, window_bounds = array<i64: 1, 512>}, {pipeline_mode = #tpu.pipeline_mode<synchronous>, transform_indices = @transform_3, window_bounds = array<i64: 512, 128>}, {pipeline_mode = #tpu.pipeline_mode<synchronous>, transform_indices = @transform_4, window_bounds = array<i64: 1, 128>}, {pipeline_mode = #tpu.pipeline_mode<synchronous>, transform_indices = @transform_5, window_bounds = array<i64: 128, 10>}, {pipeline_mode = #tpu.pipeline_mode<synchronous>, transform_indices = @transform_6, window_bounds = array<i64: 1, 10>}, {transform_indices = @transform_7, window_bounds = array<i64: 8, 10>}]} {
    %c0 = arith.constant 0 : index
    %c0_0 = arith.constant 0 : index
    %0 = vector.load %arg1[%c0, %c0_0] : memref<8x896xbf16, #tpu.memory_space<vmem>>, vector<8x896xbf16>
    %c0_1 = arith.constant 0 : index
    %c0_2 = arith.constant 0 : index
    %1 = vector.load %arg2[%c0_1, %c0_2] : memref<896x512xbf16, #tpu.memory_space<vmem>>, vector<896x512xbf16>
    %cst = arith.constant dense<0.000000e+00> : vector<8x512xf32>
    %2 = tpu.matmul %0, %1, %cst {dimension_numbers = #tpu.dot_dimension_numbers<[1], [0], [0], [1], [0, 0, 1, 1], [], []>} : vector<8x896xbf16>, vector<896x512xbf16>, vector<8x512xf32> -> vector<8x512xf32>
    %c0_3 = arith.constant 0 : index
    %c0_4 = arith.constant 0 : index
    %3 = vector.load %arg3[%c0_3, %c0_4] : memref<1x512xf32, #tpu.memory_space<vmem>>, vector<1x512xf32>
    %4 = vector.broadcast %3 : vector<1x512xf32> to vector<8x512xf32>
    %5 = arith.addf %2, %4 : vector<8x512xf32>
    %cst_5 = arith.constant 0.000000e+00 : f32
    %6 = vector.broadcast %cst_5 : f32 to vector<8x512xf32>
    %7 = arith.maximumf %5, %6 : vector<8x512xf32>
    %8 = arith.truncf %7 : vector<8x512xf32> to vector<8x512xbf16>
    %c0_6 = arith.constant 0 : index
    %c0_7 = arith.constant 0 : index
    %9 = vector.load %arg4[%c0_6, %c0_7] : memref<512x128xbf16, #tpu.memory_space<vmem>>, vector<512x128xbf16>
    %cst_8 = arith.constant dense<0.000000e+00> : vector<8x128xf32>
    %10 = tpu.matmul %8, %9, %cst_8 {dimension_numbers = #tpu.dot_dimension_numbers<[1], [0], [0], [1], [0, 0, 1, 1], [], []>} : vector<8x512xbf16>, vector<512x128xbf16>, vector<8x128xf32> -> vector<8x128xf32>
    %c0_9 = arith.constant 0 : index
    %c0_10 = arith.constant 0 : index
    %11 = vector.load %arg5[%c0_9, %c0_10] : memref<1x128xf32, #tpu.memory_space<vmem>>, vector<1x128xf32>
    %12 = vector.broadcast %11 : vector<1x128xf32> to vector<8x128xf32>
    %13 = arith.addf %10, %12 : vector<8x128xf32>
    %cst_11 = arith.constant 0.000000e+00 : f32
    %14 = vector.broadcast %cst_11 : f32 to vector<8x128xf32>
    %15 = arith.maximumf %13, %14 : vector<8x128xf32>
    %16 = arith.truncf %15 : vector<8x128xf32> to vector<8x128xbf16>
    %c0_12 = arith.constant 0 : index
    %c0_13 = arith.constant 0 : index
    %17 = vector.load %arg6[%c0_12, %c0_13] : memref<128x10xbf16, #tpu.memory_space<vmem>>, vector<128x10xbf16>
    %cst_14 = arith.constant dense<0.000000e+00> : vector<8x10xf32>
    %18 = tpu.matmul %16, %17, %cst_14 {dimension_numbers = #tpu.dot_dimension_numbers<[1], [0], [0], [1], [0, 0, 1, 1], [], []>} : vector<8x128xbf16>, vector<128x10xbf16>, vector<8x10xf32> -> vector<8x10xf32>
    %c0_15 = arith.constant 0 : index
    %c0_16 = arith.constant 0 : index
    %19 = vector.load %arg7[%c0_15, %c0_16] : memref<1x10xf32, #tpu.memory_space<vmem>>, vector<1x10xf32>
    %20 = vector.broadcast %19 : vector<1x10xf32> to vector<8x10xf32>
    %21 = arith.addf %18, %20 : vector<8x10xf32>
    %cst_17 = arith.constant dense<0xFF800000> : vector<8xf32>
    %22 = vector.multi_reduction <maximumf>, %21, %cst_17 [1] : vector<8x10xf32> to vector<8xf32>
    %23 = vector.shape_cast %22 : vector<8xf32> to vector<8x1xf32>
    %24 = vector.broadcast %23 : vector<8x1xf32> to vector<8x10xf32>
    %25 = arith.subf %21, %24 : vector<8x10xf32>
    %26 = math.exp %25 : vector<8x10xf32>
    %cst_18 = arith.constant dense<0.000000e+00> : vector<8xf32>
    %27 = vector.multi_reduction <add>, %26, %cst_18 [1] : vector<8x10xf32> to vector<8xf32>
    %28 = vector.shape_cast %27 : vector<8xf32> to vector<8x1xf32>
    %29 = math.log %28 : vector<8x1xf32>
    %30 = vector.broadcast %29 : vector<8x1xf32> to vector<8x10xf32>
    %31 = arith.subf %25, %30 : vector<8x10xf32>
    %c0_19 = arith.constant 0 : index
    %c0_20 = arith.constant 0 : index
    %32 = vector.load %arg8[%c0_19, %c0_20] : memref<8x10xf32, #tpu.memory_space<vmem>>, vector<8x10xf32>
    tpu.vector_store %arg8[%c0_19, %c0_20], %31 {strides = array<i32>} : memref<8x10xf32, #tpu.memory_space<vmem>>, vector<8x10xf32>,
    return
  }
  func.func @transform_0(%arg0: i32) -> (i32, i32) {
    %c0_i32 = arith.constant 0 : i32
    %c0_i32_0 = arith.constant 0 : i32
    return %arg0, %c0_i32 : i32, i32
  }
  func.func @transform_1(%arg0: i32) -> (i32, i32) {
    %c0_i32 = arith.constant 0 : i32
    %c0_i32_0 = arith.constant 0 : i32
    %c0_i32_1 = arith.constant 0 : i32
    return %c0_i32, %c0_i32_0 : i32, i32
  }
  func.func @transform_2(%arg0: i32) -> (i32, i32) {
    %c0_i32 = arith.constant 0 : i32
    %c0_i32_0 = arith.constant 0 : i32
    %c0_i32_1 = arith.constant 0 : i32
    return %c0_i32, %c0_i32_0 : i32, i32
  }
  func.func @transform_3(%arg0: i32) -> (i32, i32) {
    %c0_i32 = arith.constant 0 : i32
    %c0_i32_0 = arith.constant 0 : i32
    %c0_i32_1 = arith.constant 0 : i32
    return %c0_i32, %c0_i32_0 : i32, i32
  }
  func.func @transform_4(%arg0: i32) -> (i32, i32) {
    %c0_i32 = arith.constant 0 : i32
    %c0_i32_0 = arith.constant 0 : i32
    %c0_i32_1 = arith.constant 0 : i32
    return %c0_i32, %c0_i32_0 : i32, i32
  }
  func.func @transform_5(%arg0: i32) -> (i32, i32) {
    %c0_i32 = arith.constant 0 : i32
    %c0_i32_0 = arith.constant 0 : i32
    %c0_i32_1 = arith.constant 0 : i32
    return %c0_i32, %c0_i32_0 : i32, i32
  }
  func.func @transform_6(%arg0: i32) -> (i32, i32) {
    %c0_i32 = arith.constant 0 : i32
    %c0_i32_0 = arith.constant 0 : i32
    %c0_i32_1 = arith.constant 0 : i32
    return %c0_i32, %c0_i32_0 : i32, i32
  }
  func.func @transform_7(%arg0: i32) -> (i32, i32) {
    %c0_i32 = arith.constant 0 : i32
    %c0_i32_0 = arith.constant 0 : i32
    return %arg0, %c0_i32 : i32, i32
  }
}

</mosaic_0001>

<bundles_post_ra>
// kernel: tpu_custom_call.1
= control target key start
LH: loop header
LB: loop body
LE: loop exit
PB: predicated region body
PF: predicated region fallthrough
CT: control target
= control target key end

     0   :  { %12 = vsyncpa [#allocation3], 0  ;;  %s3225_s0 = inlined_call_operand.vmem [shape: bf16[8,896], index: 0, kind: input, shape index: {}]   ;;  %s3226_s1 = inlined_call_operand.hbm [shape: bf16[896,512], index: 1, kind: input, shape index: {}]   ;;  %s3227_s2 = inlined_call_operand.vmem [shape: f32[1,512], index: 2, kind: input, shape index: {}]   ;;  %s3228_s3 = inlined_call_operand.hbm [shape: bf16[512,128], index: 3, kind: input, shape index: {}]   ;;  %s3229_s4 = inlined_call_operand.vmem [shape: f32[1,128], index: 4, kind: input, shape index: {}]   ;;  %s3230_s5 = inlined_call_operand.vmem [shape: bf16[128,10], index: 5, kind: input, shape index: {}]   ;;  %s3231_s6 = inlined_call_operand.vmem [shape: f32[1,10], index: 6, kind: input, shape index: {}]   ;;  %s3232_s7 = inlined_call_operand.hbm [shape: f32[8,10], index: 7, kind: output, shape index: {}]  }
   0x1   :  { %13 = vsyncpa [#allocation6], 0 }
   0x2   :  { %14 = vsyncpa [#allocation4], 0  ;;  %s3082_s24 = smov [#allocation2]  }
   0x3   :  { %s22_s25 = sshll.u32 %s3082_s24, 4  ;;  %s23_s25 = int_to_ptr.vmem [resolvable:$true] %s22_s25 }
   0x4   :  { %s3024_s26 = scalar_lea.vmem %s23_s25, 28672  ;;  %p3029_p1 = scmp.lt.s32.totalorder %s23_s25, %s23_s25 }
   0x5   :  { %p3025_p0 = scmp.ne.s32.totalorder %s23_s25, %s3024_s26  ;;  %p3030_p2 = scmp.lt.s32.totalorder %s3024_s26, %s3024_s26 }
   0x7   :  { %p3031_p3 = por %p3030_p2, %p3029_p1 }
   0x9   :  { %p3032_p4 = pnand %p3031_p3, %p3025_p0 }
   0xb   :  { %3035 = shalt.err (!%p3032_p4)
}
   0xc   :  { %s3083_s27 = smov 256   ;;  %s3084_s28 = smov 16  }
   0xd   :  { %28 = dma.hbm_to_vmem [thread:$0]  %s3226_s1, 28672, %s23_s25, [#allocation3], %s3083_s27, %s3083_s27, %s3084_s28  }
   0xe   :  { %s3085_s8 = smov [#allocation5]  }
   0xf   :  { %s36_s9 = sshll.u32 %s3085_s8, 4  ;;  %s37_s9 = int_to_ptr.vmem [resolvable:$true] %s36_s9 }
  0x10   :  { %s3044_s10 = scalar_lea.vmem %s37_s9, 4096  ;;  %p3049_p6 = scmp.lt.s32.totalorder %s37_s9, %s37_s9 }
  0x11   :  { %p3045_p5 = scmp.ne.s32.totalorder %s37_s9, %s3044_s10  ;;  %p3050_p7 = scmp.lt.s32.totalorder %s3044_s10, %s3044_s10 }
  0x13   :  { %p3051_p8 = por %p3050_p7, %p3049_p6 }
  0x15   :  { %p3052_p9 = pnand %p3051_p8, %p3045_p5 }
  0x17   :  { %3055 = shalt.err (!%p3052_p9)
}
  0x18   :  { %s3086_s11 = smov 64   ;;  %s3087_s12 = smov 4  }
  0x19   :  { %42 = dma.hbm_to_vmem [thread:$0]  %s3228_s3, 4096, %s37_s9, [#allocation6], %s3086_s11, %s3086_s11, %s3087_s12  }
  0x1a   :  { %3076 = dma.done.wait [#allocation3], 28672  }
  0x1b   :  { %3077 = vsyncadd [#allocation3], 4294938624 }
  0x1c   :  { %3078 = dma.done.wait [#allocation6], 4096  }
  0x1d   :  { %3079 = vsyncadd [#allocation6], 4294963200  ;;  %v2629_v0 = vld [vmem:[#allocation2 + $0xe4] ss:$16 sps:$4 sm:$0xff]   ;;  %v2633_v2 = vld [vmem:[#allocation2 + $0xe0] ss:$16 sps:$4 sm:$0xff]  }
  0x1e   :  { %v2631_v1 = vld [vmem:[#allocation2 + $0x2e4] ss:$16 sps:$4 sm:$0xff]   ;;  %1451 = vmatprep.subr.bf16.mxu0 %v2629_v0  ;;  %v2634_v3 = vld [vmem:[#allocation2 + $0x2e0] ss:$16 sps:$4 sm:$0xff]   ;;  %v57_v48 = vld [vmem:[%s3225_s0 + $0x8] sm:$0xff]  ;;  %vm3090_vm0 = vmmov 0  }
  0x1f   :  { %1492 = vmatprep.subr.bf16.mxu1 %v2631_v1  ;;  %v2635_v4 = vld [vmem:[#allocation2 + $0xc4] ss:$16 sps:$4 sm:$0xff]   ;;  %1452 = vmatpush1.bf16.msra.mxu0 %v2633_v2  ;;  %v2639_v6 = vld [vmem:[#allocation2 + $0xc0] ss:$16 sps:$4 sm:$0xff]   ;;  %v3146_v51 = vcombine.high %v57_v48, %v57_v48  ;;  %vm2243_vm1 = vcmask 80896  }
  0x20   :  { %1493 = vmatpush1.bf16.msra.mxu1 %v2634_v3  ;;  %v2637_v5 = vld [vmem:[#allocation2 + $0x2c4] ss:$16 sps:$4 sm:$0xff]   ;;  %1453 = vmatprep.subr.bf16.mxu0 %v2635_v4  ;;  %v2640_v7 = vld [vmem:[#allocation2 + $0x2c0] ss:$16 sps:$4 sm:$0xff]  }
  0x21   :  { %1494 = vmatprep.subr.bf16.mxu1 %v2637_v5  ;;  %v2641_v8 = vld [vmem:[#allocation2 + $0xa4] ss:$16 sps:$4 sm:$0xff]   ;;  %v2645_v10 = vld [vmem:[#allocation2 + $0xa0] ss:$16 sps:$4 sm:$0xff]   ;;  %1524 = vmatprep.mubr.bf16.mxu1 %v3146_v51 }
  0x22   :  { %v2643_v9 = vld [vmem:[#allocation2 + $0x2a4] ss:$16 sps:$4 sm:$0xff]   ;;  %v2646_v11 = vld [vmem:[#allocation2 + $0x2a0] ss:$16 sps:$4 sm:$0xff]  }
  0x23   :  { %1454 = vmatpush1.bf16.msra.mxu0 %v2639_v6  ;;  %v2647_v12 = vld [vmem:[#allocation2 + $0x84] ss:$16 sps:$4 sm:$0xff]   ;;  %v2651_v14 = vld [vmem:[#allocation2 + $0x80] ss:$16 sps:$4 sm:$0xff]  }
  0x24   :  { %1495 = vmatpush1.bf16.msra.mxu1 %v2640_v7  ;;  %1455 = vmatprep.subr.bf16.mxu0 %v2641_v8  ;;  %v2649_v13 = vld [vmem:[#allocation2 + $0x284] ss:$16 sps:$4 sm:$0xff]   ;;  %v2652_v15 = vld [vmem:[#allocation2 + $0x280] ss:$16 sps:$4 sm:$0xff]   ;;  %v3152_v7 = vcombine.low %v57_v48, %v57_v48  ;;  %v2789_v48 = vld [vmem:[#allocation2 + $0xcc] ss:$16 sps:$4 sm:$0xff]  }
  0x25   :  { %1496 = vmatprep.subr.bf16.mxu1 %v2643_v9  ;;  %v2653_v16 = vld [vmem:[#allocation2 + $0x64] ss:$16 sps:$4 sm:$0xff]   ;;  %v2657_v18 = vld [vmem:[#allocation2 + $0x60] ss:$16 sps:$4 sm:$0xff]  }
  0x26   :  { %v2655_v17 = vld [vmem:[#allocation2 + $0x264] ss:$16 sps:$4 sm:$0xff]   ;;  %v2658_v19 = vld [vmem:[#allocation2 + $0x260] ss:$16 sps:$4 sm:$0xff]  }
  0x27   :  { %1456 = vmatpush1.bf16.msra.mxu0 %v2645_v10  ;;  %v2659_v20 = vld [vmem:[#allocation2 + $0x44] ss:$16 sps:$4 sm:$0xff]   ;;  %v2663_v22 = vld [vmem:[#allocation2 + $0x40] ss:$16 sps:$4 sm:$0xff]  }
  0x28   :  { %1497 = vmatpush1.bf16.msra.mxu1 %v2646_v11  ;;  %1457 = vmatprep.subr.bf16.mxu0 %v2647_v12  ;;  %v2661_v21 = vld [vmem:[#allocation2 + $0x244] ss:$16 sps:$4 sm:$0xff]   ;;  %v2664_v23 = vld [vmem:[#allocation2 + $0x240] ss:$16 sps:$4 sm:$0xff]  }
  0x29   :  { %1498 = vmatprep.subr.bf16.mxu1 %v2649_v13  ;;  %v2665_v24 = vld [vmem:[#allocation2 + $0x24] ss:$16 sps:$4 sm:$0xff]   ;;  %v2669_v26 = vld [vmem:[#allocation2 + $0x20] ss:$16 sps:$4 sm:$0xff]  }
  0x2a   :  { %v2667_v25 = vld [vmem:[#allocation2 + $0x224] ss:$16 sps:$4 sm:$0xff]   ;;  %v2670_v27 = vld [vmem:[#allocation2 + $0x220] ss:$16 sps:$4 sm:$0xff]  }
  0x2b   :  { %1458 = vmatpush1.bf16.msra.mxu0 %v2651_v14  ;;  %v2671_v28 = vld [vmem:[#allocation2 + $0x4] ss:$16 sps:$4 sm:$0xff]   ;;  %v2675_v30 = vld [vmem:[#allocation2] ss:$16 sps:$4 sm:$0xff]  }
  0x2c   :  { %1499 = vmatpush1.bf16.msra.mxu1 %v2652_v15  ;;  %1459 = vmatprep.subr.bf16.mxu0 %v2653_v16  ;;  %v2673_v29 = vld [vmem:[#allocation2 + $0x204] ss:$16 sps:$4 sm:$0xff]   ;;  %v2676_v31 = vld [vmem:[#allocation2 + $0x200] ss:$16 sps:$4 sm:$0xff]   ;;  %v3088_v16 = vmov 0  }
  0x2d   :  { %1500 = vmatprep.subr.bf16.mxu1 %v2655_v17  ;;  %v2677_v32 = vld [vmem:[#allocation2 + $0x1e4] ss:$16 sps:$4 sm:$0xff]   ;;  %v2681_v34 = vld [vmem:[#allocation2 + $0x1e0] ss:$16 sps:$4 sm:$0xff]  }
  0x2e   :  { %v2679_v33 = vld [vmem:[#allocation2 + $0x3e4] ss:$16 sps:$4 sm:$0xff]   ;;  %v2682_v35 = vld [vmem:[#allocation2 + $0x3e0] ss:$16 sps:$4 sm:$0xff]  }
  0x2f   :  { %1460 = vmatpush1.bf16.msra.mxu0 %v2657_v18  ;;  %v2683_v36 = vld [vmem:[#allocation2 + $0x1c4] ss:$16 sps:$4 sm:$0xff]   ;;  %v2687_v38 = vld [vmem:[#allocation2 + $0x1c0] ss:$16 sps:$4 sm:$0xff]  }
  0x30   :  { %1501 = vmatpush1.bf16.msra.mxu1 %v2658_v19  ;;  %1461 = vmatprep.subr.bf16.mxu0 %v2659_v20  ;;  %v2685_v37 = vld [vmem:[#allocation2 + $0x3c4] ss:$16 sps:$4 sm:$0xff]   ;;  %v2688_v39 = vld [vmem:[#allocation2 + $0x3c0] ss:$16 sps:$4 sm:$0xff]  }
  0x31   :  { %1502 = vmatprep.subr.bf16.mxu1 %v2661_v21  ;;  %v2689_v40 = vld [vmem:[#allocation2 + $0x1a4] ss:$16 sps:$4 sm:$0xff]   ;;  %v2693_v42 = vld [vmem:[#allocation2 + $0x1a0] ss:$16 sps:$4 sm:$0xff]  }
  0x32   :  { %v2691_v41 = vld [vmem:[#allocation2 + $0x3a4] ss:$16 sps:$4 sm:$0xff]   ;;  %v2694_v43 = vld [vmem:[#allocation2 + $0x3a0] ss:$16 sps:$4 sm:$0xff]  }
  0x33   :  { %1462 = vmatpush1.bf16.msra.mxu0 %v2663_v22  ;;  %v2695_v44 = vld [vmem:[#allocation2 + $0x184] ss:$16 sps:$4 sm:$0xff]   ;;  %v2699_v49 = vld [vmem:[#allocation2 + $0x180] ss:$16 sps:$4 sm:$0xff]  }
  0x34   :  { %1503 = vmatpush1.bf16.msra.mxu1 %v2664_v23  ;;  %1463 = vmatprep.subr.bf16.mxu0 %v2665_v24  ;;  %v2697_v45 = vld [vmem:[#allocation2 + $0x384] ss:$16 sps:$4 sm:$0xff]   ;;  %v2700_v50 = vld [vmem:[#allocation2 + $0x380] ss:$16 sps:$4 sm:$0xff]  }
  0x35   :  { %1504 = vmatprep.subr.bf16.mxu1 %v2667_v25  ;;  %v56_v46 = vld [vmem:[%s3225_s0] sm:$0xff] }
  0x36   :  { %v3141_v47 = vcombine.high %v56_v46, %v56_v46  ;;  %v2701_v52 = vld [vmem:[#allocation2 + $0x164] ss:$16 sps:$4 sm:$0xff]   ;;  %v2705_v54 = vld [vmem:[#allocation2 + $0x160] ss:$16 sps:$4 sm:$0xff]   ;;  %v3150_v6 = vcombine.low %v56_v46, %v56_v46 }
  0x37   :  { %1464 = vmatpush1.bf16.msra.mxu0 %v2669_v26  ;;  %v2703_v53 = vld [vmem:[#allocation2 + $0x364] ss:$16 sps:$4 sm:$0xff]   ;;  %v2706_v55 = vld [vmem:[#allocation2 + $0x360] ss:$16 sps:$4 sm:$0xff]  }
  0x38   :  { %1505 = vmatpush1.bf16.msra.mxu1 %v2670_v27  ;;  %1465 = vmatprep.subr.bf16.mxu0 %v2671_v28  ;;  %v2707_v56 = vld [vmem:[#allocation2 + $0x144] ss:$16 sps:$4 sm:$0xff]   ;;  %v2711_v58 = vld [vmem:[#allocation2 + $0x140] ss:$16 sps:$4 sm:$0xff]  }
  0x39   :  { %1506 = vmatprep.subr.bf16.mxu1 %v2673_v29  ;;  %1483 = vmatprep.mubr.bf16.mxu0 %v3141_v47  ;;  %v2709_v57 = vld [vmem:[#allocation2 + $0x344] ss:$16 sps:$4 sm:$0xff]   ;;  %v2712_v59 = vld [vmem:[#allocation2 + $0x340] ss:$16 sps:$4 sm:$0xff]  }
  0x3a   :  { %v2713_v60 = vld [vmem:[#allocation2 + $0x124] ss:$16 sps:$4 sm:$0xff]   ;;  %v2717_v62 = vld [vmem:[#allocation2 + $0x120] ss:$16 sps:$4 sm:$0xff]  }
  0x3b   :  { %1466 = vmatpush1.bf16.msra.mxu0 %v2675_v30  ;;  %v2715_v61 = vld [vmem:[#allocation2 + $0x324] ss:$16 sps:$4 sm:$0xff]   ;;  %v2718_v63 = vld [vmem:[#allocation2 + $0x320] ss:$16 sps:$4 sm:$0xff]  }
  0x3c   :  { %1507 = vmatpush1.bf16.msra.mxu1 %v2676_v31  ;;  %1467 = vmatprep.subr.bf16.mxu0 %v2677_v32  ;;  %v2719_v0 = vld [vmem:[#allocation2 + $0x104] ss:$16 sps:$4 sm:$0xff]   ;;  %v2723_v2 = vld [vmem:[#allocation2 + $0x100] ss:$16 sps:$4 sm:$0xff]  }
  0x3d   :  { %1508 = vmatprep.subr.bf16.mxu1 %v2679_v33  ;;  %v2721_v1 = vld [vmem:[#allocation2 + $0x304] ss:$16 sps:$4 sm:$0xff]   ;;  %v2724_v3 = vld [vmem:[#allocation2 + $0x300] ss:$16 sps:$4 sm:$0xff]  }
  0x3e   :  { %v2731_v4 = vld [vmem:[#allocation2 + $0x4e4] ss:$16 sps:$4 sm:$0xff]   ;;  %v2729_v8 = vld [vmem:[#allocation2 + $0x4e0] ss:$16 sps:$4 sm:$0xff]  }
  0x3f   :  { %1468 = vmatpush2.bf16.msra.mxu0 %v2681_v34  ;;  %v2734_v5 = vld [vmem:[#allocation2 + $0x6e4] ss:$16 sps:$4 sm:$0xff]   ;;  %v2732_v9 = vld [vmem:[#allocation2 + $0x6e0] ss:$16 sps:$4 sm:$0xff]  }
  0x40   :  { %1509 = vmatpush2.bf16.msra.mxu1 %v2682_v35  ;;  %1469 = vmatprep.subr.bf16.mxu0 %v2683_v36  ;;  %v2737_v10 = vld [vmem:[#allocation2 + $0x4c4] ss:$16 sps:$4 sm:$0xff]   ;;  %v2735_v12 = vld [vmem:[#allocation2 + $0x4c0] ss:$16 sps:$4 sm:$0xff]  }
  0x41   :  { %1510 = vmatprep.subr.bf16.mxu1 %v2685_v37  ;;  %v2740_v11 = vld [vmem:[#allocation2 + $0x6c4] ss:$16 sps:$4 sm:$0xff]   ;;  %v2738_v13 = vld [vmem:[#allocation2 + $0x6c0] ss:$16 sps:$4 sm:$0xff]  }
  0x42   :  { %v2743_v14 = vld [vmem:[#allocation2 + $0x4a4] ss:$16 sps:$4 sm:$0xff]   ;;  %v2741_v17 = vld [vmem:[#allocation2 + $0x4a0] ss:$16 sps:$4 sm:$0xff]  }
  0x43   :  { %1470 = vmatpush2.bf16.msra.mxu0 %v2687_v38  ;;  %v2746_v15 = vld [vmem:[#allocation2 + $0x6a4] ss:$16 sps:$4 sm:$0xff]   ;;  %v2744_v18 = vld [vmem:[#allocation2 + $0x6a0] ss:$16 sps:$4 sm:$0xff]  }
  0x44   :  { %1511 = vmatpush2.bf16.msra.mxu1 %v2688_v39  ;;  %1471 = vmatprep.subr.bf16.mxu0 %v2689_v40  ;;  %v2749_v19 = vld [vmem:[#allocation2 + $0x484] ss:$16 sps:$4 sm:$0xff]   ;;  %v2747_v21 = vld [vmem:[#allocation2 + $0x480] ss:$16 sps:$4 sm:$0xff]  }
  0x45   :  { %1512 = vmatprep.subr.bf16.mxu1 %v2691_v41  ;;  %v2752_v20 = vld [vmem:[#allocation2 + $0x684] ss:$16 sps:$4 sm:$0xff]   ;;  %v2750_v22 = vld [vmem:[#allocation2 + $0x680] ss:$16 sps:$4 sm:$0xff]  }
  0x46   :  { %v2755_v23 = vld [vmem:[#allocation2 + $0x464] ss:$16 sps:$4 sm:$0xff]   ;;  %v2753_v25 = vld [vmem:[#allocation2 + $0x460] ss:$16 sps:$4 sm:$0xff]  }
  0x47   :  { %1472 = vmatpush2.bf16.msra.mxu0 %v2693_v42  ;;  %v2758_v24 = vld [vmem:[#allocation2 + $0x664] ss:$16 sps:$4 sm:$0xff]   ;;  %v2756_v26 = vld [vmem:[#allocation2 + $0x660] ss:$16 sps:$4 sm:$0xff]   ;;  %v2783_v42 = vld [vmem:[#allocation2 + $0xec] ss:$16 sps:$4 sm:$0xff]  }
  0x48   :  { %1513 = vmatpush2.bf16.msra.mxu1 %v2694_v43  ;;  %1473 = vmatprep.subr.bf16.mxu0 %v2695_v44  ;;  %v2761_v27 = vld [vmem:[#allocation2 + $0x444] ss:$16 sps:$4 sm:$0xff]   ;;  %v2759_v29 = vld [vmem:[#allocation2 + $0x440] ss:$16 sps:$4 sm:$0xff]   ;;  %v3170_v44 = vld [vmem:[%s3225_s0 + $0x18] ss:$0 sps:$4 sm:$0xff]  }
  0x49   :  { %1514 = vmatprep.subr.bf16.mxu1 %v2697_v45  ;;  %v2764_v28 = vld [vmem:[#allocation2 + $0x644] ss:$16 sps:$4 sm:$0xff]   ;;  %v2762_v30 = vld [vmem:[#allocation2 + $0x640] ss:$16 sps:$4 sm:$0xff]   ;;  %v2781_v45 = vld [vmem:[#allocation2 + $0xe8] ss:$16 sps:$4 sm:$0xff]  }
  0x4a   :  { %v2767_v31 = vld [vmem:[#allocation2 + $0x424] ss:$16 sps:$4 sm:$0xff]   ;;  %v2765_v34 = vld [vmem:[#allocation2 + $0x420] ss:$16 sps:$4 sm:$0xff]  }
  0x4b   :  { %1474 = vmatpush2.bf16.msra.mxu0 %v2699_v49  ;;  %v2770_v32 = vld [vmem:[#allocation2 + $0x624] ss:$16 sps:$4 sm:$0xff]   ;;  %v2768_v36 = vld [vmem:[#allocation2 + $0x620] ss:$16 sps:$4 sm:$0xff]  }
  0x4c   :  { %1515 = vmatpush2.bf16.msra.mxu1 %v2700_v50  ;;  %1475 = vmatprep.subr.bf16.mxu0 %v2701_v52  ;;  %v3160_v33 = vld [vmem:[%s3225_s0 + $0x10] sm:$0xff]  ;;  %v2787_v50 = vld [vmem:[#allocation2 + $0xc8] ss:$16 sps:$4 sm:$0xff]  }
  0x4d   :  { %1516 = vmatprep.subr.bf16.mxu1 %v2703_v53  ;;  %v3164_v35 = vcombine.high %v3160_v33, %v3160_v33  ;;  %v2773_v37 = vld [vmem:[#allocation2 + $0x404] ss:$16 sps:$4 sm:$0xff]   ;;  %v2771_v39 = vld [vmem:[#allocation2 + $0x400] ss:$16 sps:$4 sm:$0xff]   ;;  %v2795_v53 = vld [vmem:[#allocation2 + $0xac] ss:$16 sps:$4 sm:$0xff]  }
  0x4e   :  { %v2776_v38 = vld [vmem:[#allocation2 + $0x604] ss:$16 sps:$4 sm:$0xff]   ;;  %v2774_v40 = vld [vmem:[#allocation2 + $0x600] ss:$16 sps:$4 sm:$0xff]  }
  0x4f   :  { %1476 = vmatpush2.bf16.msra.mxu0 %v2705_v54  ;;  %v2779_v41 = vld [vmem:[#allocation2 + $0x5e4] ss:$16 sps:$4 sm:$0xff]   ;;  %v2777_v43 = vld [vmem:[#allocation2 + $0x5e0] ss:$16 sps:$4 sm:$0xff]  }
  0x50   :  { %1517 = vmatpush2.bf16.msra.mxu1 %v2706_v55  ;;  %1477 = vmatprep.subr.bf16.mxu0 %v2707_v56  ;;  %v2786_v46 = vld [vmem:[#allocation2 + $0x5c4] ss:$16 sps:$4 sm:$0xff]   ;;  %v2784_v49 = vld [vmem:[#allocation2 + $0x5c0] ss:$16 sps:$4 sm:$0xff]   ;;  %v2793_v55 = vld [vmem:[#allocation2 + $0xa8] ss:$16 sps:$4 sm:$0xff]  }
  0x51   :  { %1518 = vmatprep.subr.bf16.mxu1 %v2709_v57  ;;  %v2792_v52 = vld [vmem:[#allocation2 + $0x5a4] ss:$16 sps:$4 sm:$0xff]   ;;  %v2790_v54 = vld [vmem:[#allocation2 + $0x5a0] ss:$16 sps:$4 sm:$0xff]   ;;  %v2801_v57 = vld [vmem:[#allocation2 + $0x8c] ss:$16 sps:$4 sm:$0xff]  }
  0x52   :  { %v2798_v56 = vld [vmem:[#allocation2 + $0x584] ss:$16 sps:$4 sm:$0xff]  }
  0x53   :  { %1478 = vmatpush2.bf16.msra.mxu0 %v2711_v58  ;;  %v2796_v58 = vld [vmem:[#allocation2 + $0x580] ss:$16 sps:$4 sm:$0xff]  }
  0x54   :  { %1519 = vmatpush2.bf16.msra.mxu1 %v2712_v59  ;;  %1479 = vmatprep.subr.bf16.mxu0 %v2713_v60  ;;  %v2799_v59 = vld [vmem:[#allocation2 + $0x88] ss:$16 sps:$4 sm:$0xff]   ;;  %v2804_v60 = vld [vmem:[#allocation2 + $0x564] ss:$16 sps:$4 sm:$0xff]  }
  0x55   :  { %1520 = vmatprep.subr.bf16.mxu1 %v2715_v61  ;;  %v2807_v61 = vld [vmem:[#allocation2 + $0x6c] ss:$16 sps:$4 sm:$0xff]  }
  0x57   :  { %1480 = vmatpush2.bf16.msra.mxu0 %v2717_v62  ;;  %v2802_v62 = vld [vmem:[#allocation2 + $0x560] ss:$16 sps:$4 sm:$0xff]  }
  0x58   :  { %1521 = vmatpush2.bf16.msra.mxu1 %v2718_v63  ;;  %1481 = vmatprep.subr.bf16.mxu0 %v2719_v0  ;;  %v2810_v63 = vld [vmem:[#allocation2 + $0x544] ss:$16 sps:$4 sm:$0xff]   ;;  %v2813_v0 = vld [vmem:[#allocation2 + $0x4c] ss:$16 sps:$4 sm:$0xff]  }
  0x59   :  { %1522 = vmatprep.subr.bf16.mxu1 %v2721_v1  ;;  %v2808_v1 = vld [vmem:[#allocation2 + $0x540] ss:$16 sps:$4 sm:$0xff]  }
  0x5b   :  { %1482 = vmatpush2.bf16.msra.mxu0 %v2723_v2  ;;  %v2811_v2 = vld [vmem:[#allocation2 + $0x48] ss:$16 sps:$4 sm:$0xff]  }
  0x5c   :  { %1523 = vmatpush2.bf16.msra.mxu1 %v2724_v3  ;;  %1533 = vmatprep.subr.bf16.mxu0 %v2731_v4  ;;  %v2816_v3 = vld [vmem:[#allocation2 + $0x524] ss:$16 sps:$4 sm:$0xff]   ;;  %v2819_v4 = vld [vmem:[#allocation2 + $0x2c] ss:$16 sps:$4 sm:$0xff]  }
  0x5d   :  { %1574 = vmatprep.subr.bf16.mxu1 %v2734_v5  ;;  %v2814_v5 = vld [vmem:[#allocation2 + $0x520] ss:$16 sps:$4 sm:$0xff]  }
  0x5e   :  { %1484 = vmatmul.mubr.bf16.vlgmr.msra.gmra.mxu0 %v3150_v6 }
  0x5f   :  { %1525 = vmatmul.mubr.bf16.vlgmr.msra.gmra.mxu1 %v3152_v7  ;;  %1534 = vmatpush1.bf16.msra.mxu0 %v2729_v8  ;;  %v2817_v8 = vld [vmem:[#allocation2 + $0x28] ss:$16 sps:$4 sm:$0xff]  }
  0x60   :  { %1575 = vmatpush1.bf16.msra.mxu1 %v2732_v9  ;;  %1535 = vmatprep.subr.bf16.mxu0 %v2737_v10  ;;  %v2822_v9 = vld [vmem:[#allocation2 + $0x504] ss:$16 sps:$4 sm:$0xff]   ;;  %v2825_v10 = vld [vmem:[#allocation2 + $0xc] ss:$16 sps:$4 sm:$0xff]  }
  0x61   :  { %1576 = vmatprep.subr.bf16.mxu1 %v2740_v11  ;;  %1606 = vmatprep.mubr.bf16.mxu1 %v3088_v16  ;;  %v2820_v11 = vld [vmem:[#allocation2 + $0x500] ss:$16 sps:$4 sm:$0xff]  }
  0x62   :  { %1565 = vmatprep.mubr.bf16.mxu0 %v3164_v35 }
  0x63   :  { %1536 = vmatpush1.bf16.msra.mxu0 %v2735_v12  ;;  %v2823_v12 = vld [vmem:[#allocation2 + $0x8] ss:$16 sps:$4 sm:$0xff]  }
  0x64   :  { %1577 = vmatpush1.bf16.msra.mxu1 %v2738_v13  ;;  %1537 = vmatprep.subr.bf16.mxu0 %v2743_v14  ;;  %v2830_v13 = vld [vmem:[#allocation2 + $0x1ec] ss:$16 sps:$4 sm:$0xff]  }
  0x65   :  { %1578 = vmatprep.subr.bf16.mxu1 %v2746_v15  ;;  %v2833_v14 = vld [vmem:[#allocation2 + $0x2ec] ss:$16 sps:$4 sm:$0xff]   ;;  %v3176_v15 = vcombine.low %v3160_v33, %v3160_v33  ;;  %v2852_v33 = vld [vmem:[#allocation2 + $0x168] ss:$16 sps:$4 sm:$0xff]  }
  0x67   :  { %1538 = vmatpush1.bf16.msra.mxu0 %v2741_v17  ;;  %v2828_v17 = vld [vmem:[#allocation2 + $0x1e8] ss:$16 sps:$4 sm:$0xff]  }
  0x68   :  { %1579 = vmatpush1.bf16.msra.mxu1 %v2744_v18  ;;  %1539 = vmatprep.subr.bf16.mxu0 %v2749_v19  ;;  %v2831_v18 = vld [vmem:[#allocation2 + $0x2e8] ss:$16 sps:$4 sm:$0xff]   ;;  %v2836_v19 = vld [vmem:[#allocation2 + $0x1cc] ss:$16 sps:$4 sm:$0xff]  }
  0x69   :  { %1580 = vmatprep.subr.bf16.mxu1 %v2752_v20  ;;  %v2839_v20 = vld [vmem:[#allocation2 + $0x2cc] ss:$16 sps:$4 sm:$0xff]  }
  0x6b   :  { %1540 = vmatpush1.bf16.msra.mxu0 %v2747_v21  ;;  %v2834_v21 = vld [vmem:[#allocation2 + $0x1c8] ss:$16 sps:$4 sm:$0xff]  }
  0x6c   :  { %1581 = vmatpush1.bf16.msra.mxu1 %v2750_v22  ;;  %1541 = vmatprep.subr.bf16.mxu0 %v2755_v23  ;;  %v2837_v22 = vld [vmem:[#allocation2 + $0x2c8] ss:$16 sps:$4 sm:$0xff]   ;;  %v2842_v23 = vld [vmem:[#allocation2 + $0x1ac] ss:$16 sps:$4 sm:$0xff]  }
  0x6d   :  { %1582 = vmatprep.subr.bf16.mxu1 %v2758_v24  ;;  %v2845_v24 = vld [vmem:[#allocation2 + $0x2ac] ss:$16 sps:$4 sm:$0xff]  }
  0x6f   :  { %1542 = vmatpush1.bf16.msra.mxu0 %v2753_v25  ;;  %v2840_v25 = vld [vmem:[#allocation2 + $0x1a8] ss:$16 sps:$4 sm:$0xff]  }
  0x70   :  { %1583 = vmatpush1.bf16.msra.mxu1 %v2756_v26  ;;  %1543 = vmatprep.subr.bf16.mxu0 %v2761_v27  ;;  %v2843_v26 = vld [vmem:[#allocation2 + $0x2a8] ss:$16 sps:$4 sm:$0xff]   ;;  %v2848_v27 = vld [vmem:[#allocation2 + $0x18c] ss:$16 sps:$4 sm:$0xff]  }
  0x71   :  { %1584 = vmatprep.subr.bf16.mxu1 %v2764_v28  ;;  %v2851_v28 = vld [vmem:[#allocation2 + $0x28c] ss:$16 sps:$4 sm:$0xff]  }
  0x73   :  { %1544 = vmatpush1.bf16.msra.mxu0 %v2759_v29  ;;  %v2846_v29 = vld [vmem:[#allocation2 + $0x188] ss:$16 sps:$4 sm:$0xff]  }
  0x74   :  { %1585 = vmatpush1.bf16.msra.mxu1 %v2762_v30  ;;  %1545 = vmatprep.subr.bf16.mxu0 %v2767_v31  ;;  %v2849_v30 = vld [vmem:[#allocation2 + $0x288] ss:$16 sps:$4 sm:$0xff]   ;;  %v2854_v31 = vld [vmem:[#allocation2 + $0x16c] ss:$16 sps:$4 sm:$0xff]  }
  0x75   :  { %1586 = vmatprep.subr.bf16.mxu1 %v2770_v32  ;;  %v2857_v32 = vld [vmem:[#allocation2 + $0x26c] ss:$16 sps:$4 sm:$0xff]  }
  0x77   :  { %1546 = vmatpush1.bf16.msra.mxu0 %v2765_v34  ;;  %v2860_v34 = vld [vmem:[#allocation2 + $0x14c] ss:$16 sps:$4 sm:$0xff]  }
  0x78   :  { %1587 = vmatpush1.bf16.msra.mxu1 %v2768_v36  ;;  %1547 = vmatprep.subr.bf16.mxu0 %v2773_v37  ;;  %v2863_v36 = vld [vmem:[#allocation2 + $0x24c] ss:$16 sps:$4 sm:$0xff]   ;;  %v2858_v37 = vld [vmem:[#allocation2 + $0x148] ss:$16 sps:$4 sm:$0xff]  }
  0x79   :  { %1588 = vmatprep.subr.bf16.mxu1 %v2776_v38  ;;  %v2861_v38 = vld [vmem:[#allocation2 + $0x248] ss:$16 sps:$4 sm:$0xff]  }
  0x7b   :  { %1548 = vmatpush1.bf16.msra.mxu0 %v2771_v39  ;;  %v2866_v39 = vld [vmem:[#allocation2 + $0x12c] ss:$16 sps:$4 sm:$0xff]  }
  0x7c   :  { %1589 = vmatpush1.bf16.msra.mxu1 %v2774_v40  ;;  %1549 = vmatprep.subr.bf16.mxu0 %v2779_v41  ;;  %v2869_v40 = vld [vmem:[#allocation2 + $0x22c] ss:$16 sps:$4 sm:$0xff]   ;;  %v2864_v41 = vld [vmem:[#allocation2 + $0x128] ss:$16 sps:$4 sm:$0xff]  }
  0x7d   :  { %1615 = vmatprep.subr.bf16.mxu1 %v2783_v42  ;;  %v2867_v42 = vld [vmem:[#allocation2 + $0x228] ss:$16 sps:$4 sm:$0xff]  }
  0x7f   :  { %1607 = vmatmul.mubr.bf16.vlgmr.msra.gmra.mxu1 %v3170_v44  ;;  %1550 = vmatpush2.bf16.msra.mxu0 %v2777_v43  ;;  %v2872_v43 = vld [vmem:[#allocation2 + $0x10c] ss:$16 sps:$4 sm:$0xff]  }
  0x80   :  { %1616 = vmatpush1.bf16.msra.mxu1 %v2781_v45  ;;  %1551 = vmatprep.subr.bf16.mxu0 %v2786_v46  ;;  %v2875_v45 = vld [vmem:[#allocation2 + $0x20c] ss:$16 sps:$4 sm:$0xff]   ;;  %v2870_v46 = vld [vmem:[#allocation2 + $0x108] ss:$16 sps:$4 sm:$0xff]  }
  0x81   :  { %1617 = vmatprep.subr.bf16.mxu1 %v2789_v48  ;;  %1647 = vmatprep.mubr.bf16.mxu1 %v3141_v47  ;;  %v2805_v47 = vld [vmem:[#allocation2 + $0x68] ss:$16 sps:$4 sm:$0xff]  }
  0x82   :  { %v2873_v48 = vld [vmem:[#allocation2 + $0x208] ss:$16 sps:$4 sm:$0xff]  }
  0x83   :  { %1552 = vmatpush2.bf16.msra.mxu0 %v2784_v49  ;;  %v2878_v49 = vld [vmem:[#allocation2 + $0x3ec] ss:$16 sps:$4 sm:$0xff]  }
  0x84   :  { %1618 = vmatpush1.bf16.msra.mxu1 %v2787_v50  ;;  %1553 = vmatprep.subr.bf16.mxu0 %v2792_v52  ;;  %v2881_v50 = vld [vmem:[#allocation2 + $0x4ec] ss:$16 sps:$4 sm:$0xff]   ;;  %v2876_v52 = vld [vmem:[#allocation2 + $0x3e8] ss:$16 sps:$4 sm:$0xff]  }
  0x85   :  { %1619 = vmatprep.subr.bf16.mxu1 %v2795_v53  ;;  %v2879_v53 = vld [vmem:[#allocation2 + $0x4e8] ss:$16 sps:$4 sm:$0xff]  }
  0x87   :  { %1554 = vmatpush2.bf16.msra.mxu0 %v2790_v54  ;;  %v2884_v54 = vld [vmem:[#allocation2 + $0x3cc] ss:$16 sps:$4 sm:$0xff]  }
  0x88   :  { %1620 = vmatpush1.bf16.msra.mxu1 %v2793_v55  ;;  %1555 = vmatprep.subr.bf16.mxu0 %v2798_v56  ;;  %v2887_v55 = vld [vmem:[#allocation2 + $0x4cc] ss:$16 sps:$4 sm:$0xff]   ;;  %v2882_v56 = vld [vmem:[#allocation2 + $0x3c8] ss:$16 sps:$4 sm:$0xff]  }
  0x89   :  { %1621 = vmatprep.subr.bf16.mxu1 %v2801_v57  ;;  %v2885_v57 = vld [vmem:[#allocation2 + $0x4c8] ss:$16 sps:$4 sm:$0xff]  }
  0x8b   :  { %1556 = vmatpush2.bf16.msra.mxu0 %v2796_v58  ;;  %v2890_v58 = vld [vmem:[#allocation2 + $0x3ac] ss:$16 sps:$4 sm:$0xff]  }
  0x8c   :  { %1622 = vmatpush1.bf16.msra.mxu1 %v2799_v59  ;;  %1557 = vmatprep.subr.bf16.mxu0 %v2804_v60  ;;  %v2893_v59 = vld [vmem:[#allocation2 + $0x4ac] ss:$16 sps:$4 sm:$0xff]   ;;  %v2888_v60 = vld [vmem:[#allocation2 + $0x3a8] ss:$16 sps:$4 sm:$0xff]  }
  0x8d   :  { %1623 = vmatprep.subr.bf16.mxu1 %v2807_v61  ;;  %v2891_v61 = vld [vmem:[#allocation2 + $0x4a8] ss:$16 sps:$4 sm:$0xff]  }
  0x8f   :  { %1558 = vmatpush2.bf16.msra.mxu0 %v2802_v62  ;;  %v2896_v62 = vld [vmem:[#allocation2 + $0x38c] ss:$16 sps:$4 sm:$0xff]  }
  0x90   :  { %1624 = vmatpush1.bf16.msra.mxu1 %v2805_v47  ;;  %1559 = vmatprep.subr.bf16.mxu0 %v2810_v63  ;;  %v2899_v47 = vld [vmem:[#allocation2 + $0x48c] ss:$16 sps:$4 sm:$0xff]   ;;  %v2894_v63 = vld [vmem:[#allocation2 + $0x388] ss:$16 sps:$4 sm:$0xff]  }
  0x91   :  { %1625 = vmatprep.subr.bf16.mxu1 %v2813_v0  ;;  %v2897_v0 = vld [vmem:[#allocation2 + $0x488] ss:$16 sps:$4 sm:$0xff]  }
  0x93   :  { %1560 = vmatpush2.bf16.msra.mxu0 %v2808_v1  ;;  %v2902_v1 = vld [vmem:[#allocation2 + $0x36c] ss:$16 sps:$4 sm:$0xff]  }
  0x94   :  { %1626 = vmatpush1.bf16.msra.mxu1 %v2811_v2  ;;  %1561 = vmatprep.subr.bf16.mxu0 %v2816_v3  ;;  %v2900_v2 = vld [vmem:[#allocation2 + $0x368] ss:$16 sps:$4 sm:$0xff]  }
  0x95   :  { %1627 = vmatprep.subr.bf16.mxu1 %v2819_v4  ;;  %v2903_v3 = vld [vmem:[#allocation2 + $0x468] ss:$16 sps:$4 sm:$0xff]   ;;  %v2908_v4 = vld [vmem:[#allocation2 + $0x34c] ss:$16 sps:$4 sm:$0xff]  }
  0x97   :  { %1562 = vmatpush2.bf16.msra.mxu0 %v2814_v5  ;;  %v2911_v5 = vld [vmem:[#allocation2 + $0x44c] ss:$16 sps:$4 sm:$0xff]  }
  0x98   :  { %1628 = vmatpush1.bf16.msra.mxu1 %v2817_v8  ;;  %1563 = vmatprep.subr.bf16.mxu0 %v2822_v9  ;;  %v2909_v8 = vld [vmem:[#allocation2 + $0x448] ss:$16 sps:$4 sm:$0xff]   ;;  %v2914_v9 = vld [vmem:[#allocation2 + $0x32c] ss:$16 sps:$4 sm:$0xff]  }
  0x99   :  { %1629 = vmatprep.subr.bf16.mxu1 %v2825_v10  ;;  %v2917_v10 = vld [vmem:[#allocation2 + $0x42c] ss:$16 sps:$4 sm:$0xff]  }
  0x9b   :  { %1564 = vmatpush2.bf16.msra.mxu0 %v2820_v11  ;;  %v2912_v11 = vld [vmem:[#allocation2 + $0x328] ss:$16 sps:$4 sm:$0xff]  }
  0x9c   :  { %1630 = vmatpush1.bf16.msra.mxu1 %v2823_v12  ;;  %1656 = vmatprep.subr.bf16.mxu0 %v2833_v14  ;;  %v2915_v12 = vld [vmem:[#allocation2 + $0x428] ss:$16 sps:$4 sm:$0xff]   ;;  %v2923_v14 = vld [vmem:[#allocation2 + $0x40c] ss:$16 sps:$4 sm:$0xff]  }
  0x9d   :  { %1631 = vmatprep.subr.bf16.mxu1 %v2830_v13  ;;  %v2920_v13 = vld [vmem:[#allocation2 + $0x30c] ss:$16 sps:$4 sm:$0xff]  }
  0x9e   :  { %1566 = vmatmul.mubr.bf16.vlgmr.msra.gmra.mxu0 %v3176_v15 }
  0x9f   :  { %1657 = vmatpush1.bf16.msra.mxu0 %v2831_v18  ;;  %1688 = vmatprep.mubr.bf16.mxu0 %v3146_v51  ;;  %v2855_v51 = vld [vmem:[#allocation2 + $0x268] ss:$16 sps:$4 sm:$0xff]  }
  0xa0   :  { %1632 = vmatpush2.bf16.msra.mxu1 %v2828_v17  ;;  %1658 = vmatprep.subr.bf16.mxu0 %v2839_v20  ;;  %v2918_v17 = vld [vmem:[#allocation2 + $0x308] ss:$16 sps:$4 sm:$0xff]   ;;  %v2929_v20 = vld [vmem:[#allocation2 + $0x6ec] ss:$16 sps:$4 sm:$0xff]  }
  0xa1   :  { %1633 = vmatprep.subr.bf16.mxu1 %v2836_v19  ;;  %v2921_v18 = vld [vmem:[#allocation2 + $0x408] ss:$16 sps:$4 sm:$0xff]   ;;  %v2926_v19 = vld [vmem:[#allocation2 + $0x5ec] ss:$16 sps:$4 sm:$0xff]  }
  0xa3   :  { %1659 = vmatpush1.bf16.msra.mxu0 %v2837_v22  ;;  %v2927_v22 = vld [vmem:[#allocation2 + $0x6e8] ss:$16 sps:$4 sm:$0xff]  }
  0xa4   :  { %1634 = vmatpush2.bf16.msra.mxu1 %v2834_v21  ;;  %1660 = vmatprep.subr.bf16.mxu0 %v2845_v24  ;;  %v2924_v21 = vld [vmem:[#allocation2 + $0x5e8] ss:$16 sps:$4 sm:$0xff]   ;;  %v2935_v24 = vld [vmem:[#allocation2 + $0x6cc] ss:$16 sps:$4 sm:$0xff]  }
  0xa5   :  { %1635 = vmatprep.subr.bf16.mxu1 %v2842_v23  ;;  %v2932_v23 = vld [vmem:[#allocation2 + $0x5cc] ss:$16 sps:$4 sm:$0xff]  }
  0xa7   :  { %1661 = vmatpush1.bf16.msra.mxu0 %v2843_v26  ;;  %v2933_v26 = vld [vmem:[#allocation2 + $0x6c8] ss:$16 sps:$4 sm:$0xff]  }
  0xa8   :  { %1636 = vmatpush2.bf16.msra.mxu1 %v2840_v25  ;;  %1662 = vmatprep.subr.bf16.mxu0 %v2851_v28  ;;  %v2930_v25 = vld [vmem:[#allocation2 + $0x5c8] ss:$16 sps:$4 sm:$0xff]   ;;  %v2941_v28 = vld [vmem:[#allocation2 + $0x6ac] ss:$16 sps:$4 sm:$0xff]  }
  0xa9   :  { %1637 = vmatprep.subr.bf16.mxu1 %v2848_v27  ;;  %v2938_v27 = vld [vmem:[#allocation2 + $0x5ac] ss:$16 sps:$4 sm:$0xff]  }
  0xab   :  { %1663 = vmatpush1.bf16.msra.mxu0 %v2849_v30  ;;  %v2939_v30 = vld [vmem:[#allocation2 + $0x6a8] ss:$16 sps:$4 sm:$0xff]  }
  0xac   :  { %1638 = vmatpush2.bf16.msra.mxu1 %v2846_v29  ;;  %1664 = vmatprep.subr.bf16.mxu0 %v2857_v32  ;;  %v2936_v29 = vld [vmem:[#allocation2 + $0x5a8] ss:$16 sps:$4 sm:$0xff]   ;;  %v2947_v32 = vld [vmem:[#allocation2 + $0x68c] ss:$16 sps:$4 sm:$0xff]  }
  0xad   :  { %1639 = vmatprep.subr.bf16.mxu1 %v2854_v31  ;;  %v2944_v31 = vld [vmem:[#allocation2 + $0x58c] ss:$16 sps:$4 sm:$0xff]  }
  0xaf   :  { %1665 = vmatpush1.bf16.msra.mxu0 %v2855_v51  ;;  %v2950_v51 = vld [vmem:[#allocation2 + $0x56c] ss:$16 sps:$4 sm:$0xff]  }
  0xb0   :  { %1640 = vmatpush2.bf16.msra.mxu1 %v2852_v33  ;;  %1666 = vmatprep.subr.bf16.mxu0 %v2863_v36  ;;  %v2945_v33 = vld [vmem:[#allocation2 + $0x688] ss:$16 sps:$4 sm:$0xff]  }
  0xb1   :  { %1641 = vmatprep.subr.bf16.mxu1 %v2860_v34  ;;  %v2953_v34 = vld [vmem:[#allocation2 + $0x66c] ss:$16 sps:$4 sm:$0xff]   ;;  %v2948_v36 = vld [vmem:[#allocation2 + $0x568] ss:$16 sps:$4 sm:$0xff]  }
  0xb3   :  { %1667 = vmatpush1.bf16.msra.mxu0 %v2861_v38  ;;  %v2959_v38 = vld [vmem:[#allocation2 + $0x64c] ss:$16 sps:$4 sm:$0xff]  }
  0xb4   :  { %1642 = vmatpush2.bf16.msra.mxu1 %v2858_v37  ;;  %1668 = vmatprep.subr.bf16.mxu0 %v2869_v40  ;;  %v2956_v37 = vld [vmem:[#allocation2 + $0x54c] ss:$16 sps:$4 sm:$0xff]   ;;  %v2957_v40 = vld [vmem:[#allocation2 + $0x648] ss:$16 sps:$4 sm:$0xff]  }
  0xb5   :  { %1643 = vmatprep.subr.bf16.mxu1 %v2866_v39  ;;  %v2954_v39 = vld [vmem:[#allocation2 + $0x548] ss:$16 sps:$4 sm:$0xff]  }
  0xb7   :  { %1669 = vmatpush1.bf16.msra.mxu0 %v2867_v42  ;;  %v2965_v42 = vld [vmem:[#allocation2 + $0x62c] ss:$16 sps:$4 sm:$0xff]  }
  0xb8   :  { %1644 = vmatpush2.bf16.msra.mxu1 %v2864_v41  ;;  %1670 = vmatprep.subr.bf16.mxu0 %v2875_v45  ;;  %v2962_v41 = vld [vmem:[#allocation2 + $0x52c] ss:$16 sps:$4 sm:$0xff]   ;;  %v2963_v45 = vld [vmem:[#allocation2 + $0x628] ss:$16 sps:$4 sm:$0xff]  }
  0xb9   :  { %1645 = vmatprep.subr.bf16.mxu1 %v2872_v43  ;;  %v2960_v43 = vld [vmem:[#allocation2 + $0x528] ss:$16 sps:$4 sm:$0xff]  }
  0xbb   :  { %1671 = vmatpush1.bf16.msra.mxu0 %v2873_v48  ;;  %v2971_v48 = vld [vmem:[#allocation2 + $0x60c] ss:$16 sps:$4 sm:$0xff]  }
  0xbc   :  { %1646 = vmatpush2.bf16.msra.mxu1 %v2870_v46  ;;  %1672 = vmatprep.subr.bf16.mxu0 %v2878_v49  ;;  %v2968_v46 = vld [vmem:[#allocation2 + $0x50c] ss:$16 sps:$4 sm:$0xff]   ;;  %v2966_v49 = vld [vmem:[#allocation2 + $0x508] ss:$16 sps:$4 sm:$0xff]  }
  0xbd   :  { %1697 = vmatprep.subr.bf16.mxu1 %v2881_v50  ;;  %v2969_v50 = vld [vmem:[#allocation2 + $0x608] ss:$16 sps:$4 sm:$0xff]  }
  0xbf   :  { %1648 = vmatmul.mubr.bf16.vlgmr.msra.gmra.mxu1 %v3150_v6  ;;  %1673 = vmatpush2.bf16.msra.mxu0 %v2876_v52  ;;  %v2905_v6 = vld [vmem:[#allocation2 + $0x46c] ss:$16 sps:$4 sm:$0xff]  }
  0xc0   :  { %1698 = vmatpush1.bf16.msra.mxu1 %v2879_v53  ;;  %1674 = vmatprep.subr.bf16.mxu0 %v2884_v54  ;;  %v2972_v52 = vld [vmem:[#allocation5 + $0x78] sm:$0xff]   ;;  %v2974_v54 = vld [vmem:[#allocation5 + $0x70] sm:$0xff]  }
  0xc1   :  { %1699 = vmatprep.subr.bf16.mxu1 %v2887_v55  ;;  %1729 = vmatprep.mubr.bf16.mxu1 %v3164_v35  ;;  %v2906_v35 = vld [vmem:[#allocation2 + $0x348] ss:$16 sps:$4 sm:$0xff]   ;;  %v2975_v55 = vld [vmem:[#allocation5 + $0x30] sm:$0xff]  }
  0xc2   :  { %v2973_v53 = vld [vmem:[#allocation5 + $0x38] sm:$0xff]  }
  0xc3   :  { %1675 = vmatpush2.bf16.msra.mxu0 %v2882_v56  ;;  %v2976_v56 = vld [vmem:[#allocation5 + $0x68] sm:$0xff]  }
  0xc4   :  { %1700 = vmatpush1.bf16.msra.mxu1 %v2885_v57  ;;  %1676 = vmatprep.subr.bf16.mxu0 %v2890_v58  ;;  %v2977_v57 = vld [vmem:[#allocation5 + $0x28] sm:$0xff]   ;;  %v2978_v58 = vld [vmem:[#allocation5 + $0x60] sm:$0xff]  }
  0xc5   :  { %1701 = vmatprep.subr.bf16.mxu1 %v2893_v59  ;;  %v2979_v59 = vld [vmem:[#allocation5 + $0x20] sm:$0xff]  }
  0xc7   :  { %1677 = vmatpush2.bf16.msra.mxu0 %v2888_v60  ;;  %v2980_v60 = vld [vmem:[#allocation5 + $0x58] sm:$0xff]  }
  0xc8   :  { %1702 = vmatpush1.bf16.msra.mxu1 %v2891_v61  ;;  %1678 = vmatprep.subr.bf16.mxu0 %v2896_v62  ;;  %v2981_v61 = vld [vmem:[#allocation5 + $0x18] sm:$0xff]   ;;  %v2982_v62 = vld [vmem:[#allocation5 + $0x50] sm:$0xff]  }
  0xc9   :  { %1703 = vmatprep.subr.bf16.mxu1 %v2899_v47  ;;  %v2985_v47 = vld [vmem:[#allocation5 + $0x8] sm:$0xff]  }
  0xcb   :  { %1679 = vmatpush2.bf16.msra.mxu0 %v2894_v63  ;;  %v2986_v63 = vld [vmem:[#allocation5 + $0x40] sm:$0xff]  }
  0xcc   :  { %1704 = vmatpush1.bf16.msra.mxu1 %v2897_v0  ;;  %1680 = vmatprep.subr.bf16.mxu0 %v2902_v1  ;;  %v2987_v0 = vld [vmem:[#allocation5] sm:$0xff]  }
  0xcd   :  { %1705 = vmatprep.subr.bf16.mxu1 %v2905_v6 }
  0xcf   :  { %1681 = vmatpush2.bf16.msra.mxu0 %v2900_v2 }
  0xd0   :  { %1706 = vmatpush1.bf16.msra.mxu1 %v2903_v3  ;;  %1682 = vmatprep.subr.bf16.mxu0 %v2908_v4 }
  0xd1   :  { %1707 = vmatprep.subr.bf16.mxu1 %v2911_v5 }
  0xd3   :  { %1683 = vmatpush2.bf16.msra.mxu0 %v2906_v35 }
  0xd4   :  { %1708 = vmatpush1.bf16.msra.mxu1 %v2909_v8  ;;  %1684 = vmatprep.subr.bf16.mxu0 %v2914_v9  ;;  %v2988_v9 = vld [vmem:[#allocation5 + $0xf8] sm:$0xff]  }
  0xd5   :  { %1709 = vmatprep.subr.bf16.mxu1 %v2917_v10  ;;  %v2989_v10 = vld [vmem:[#allocation5 + $0xb8] sm:$0xff]  }
  0xd7   :  { %1685 = vmatpush2.bf16.msra.mxu0 %v2912_v11  ;;  %v2990_v11 = vld [vmem:[#allocation5 + $0xf0] sm:$0xff]  }
  0xd8   :  { %1710 = vmatpush1.bf16.msra.mxu1 %v2915_v12  ;;  %1686 = vmatprep.subr.bf16.mxu0 %v2920_v13  ;;  %v2991_v12 = vld [vmem:[#allocation5 + $0xb0] sm:$0xff]   ;;  %v2992_v13 = vld [vmem:[#allocation5 + $0xe8] sm:$0xff]  }
  0xd9   :  { %1711 = vmatprep.subr.bf16.mxu1 %v2923_v14  ;;  %v2993_v14 = vld [vmem:[#allocation5 + $0xa8] sm:$0xff]  }
  0xdb   :  { %1687 = vmatpush2.bf16.msra.mxu0 %v2918_v17  ;;  %v2994_v17 = vld [vmem:[#allocation5 + $0xe0] sm:$0xff]  }
  0xdc   :  { %1712 = vmatpush1.bf16.msra.mxu1 %v2921_v18  ;;  %1738 = vmatprep.subr.bf16.mxu0 %v2929_v20  ;;  %v2995_v18 = vld [vmem:[#allocation5 + $0xa0] sm:$0xff]   ;;  %v2997_v20 = vld [vmem:[#allocation5 + $0x98] sm:$0xff]  }
  0xdd   :  { %1713 = vmatprep.subr.bf16.mxu1 %v2926_v19  ;;  %v2996_v19 = vld [vmem:[#allocation5 + $0xd8] sm:$0xff]  }
  0xde   :  { %1689 = vmatmul.mubr.bf16.vlgmr.msra.gmra.mxu0 %v3152_v7  ;;  %v2942_v7 = vld [vmem:[#allocation2 + $0x588] ss:$16 sps:$4 sm:$0xff]  }
  0xdf   :  { %1739 = vmatpush1.bf16.msra.mxu0 %v2927_v22  ;;  %1770 = vmatprep.mubr.bf16.mxu0 %v3088_v16  ;;  %v2951_v16 = vld [vmem:[#allocation2 + $0x668] ss:$16 sps:$4 sm:$0xff]   ;;  %v2999_v22 = vld [vmem:[#allocation5 + $0x90] sm:$0xff]  }
  0xe0   :  { %1714 = vmatpush2.bf16.msra.mxu1 %v2924_v21  ;;  %1740 = vmatprep.subr.bf16.mxu0 %v2935_v24  ;;  %v2998_v21 = vld [vmem:[#allocation5 + $0xd0] sm:$0xff]  }
  0xe1   :  { %1715 = vmatprep.subr.bf16.mxu1 %v2932_v23 }
  0xe3   :  { %1741 = vmatpush1.bf16.msra.mxu0 %v2933_v26  ;;  %v3001_v26 = vld [vmem:[#allocation5 + $0x88] sm:$0xff]  }
  0xe4   :  { %1716 = vmatpush2.bf16.msra.mxu1 %v2930_v25  ;;  %1742 = vmatprep.subr.bf16.mxu0 %v2941_v28  ;;  %v3000_v25 = vld [vmem:[#allocation5 + $0xc8] sm:$0xff]  }
  0xe5   :  { %1717 = vmatprep.subr.bf16.mxu1 %v2938_v27 }
  0xe7   :  { %1743 = vmatpush1.bf16.msra.mxu0 %v2939_v30  ;;  %v3003_v30 = vld [vmem:[#allocation5 + $0x80] sm:$0xff]  }
  0xe8   :  { %1718 = vmatpush2.bf16.msra.mxu1 %v2936_v29  ;;  %1744 = vmatprep.subr.bf16.mxu0 %v2947_v32  ;;  %v3002_v29 = vld [vmem:[#allocation5 + $0xc0] sm:$0xff]  }
  0xe9   :  { %1719 = vmatprep.subr.bf16.mxu1 %v2944_v31  ;;  %v286_v31 = vlaneseq }
  0xeb   :  { %1745 = vmatpush1.bf16.msra.mxu0 %v2945_v33  ;;  %v287_v32 = vshrl.u32 %v286_v31, 7  ;;  %v284_v33 = vld [vmem:[%s3227_s2] sm:$0xf] }
  0xec   :  { %1720 = vmatpush2.bf16.msra.mxu1 %v2942_v7  ;;  %1746 = vmatprep.subr.bf16.mxu0 %v2953_v34 }
  0xed   :  { %1721 = vmatprep.subr.bf16.mxu1 %v2950_v51  ;;  %v288_v7 = vsub.s32 0, %v287_v32  ;;  %v292_v51 = vsub.s32 1, %v287_v32 }
  0xef   :  { %1747 = vmatpush1.bf16.msra.mxu0 %v2951_v16  ;;  %v289_v34 = vrot.slane %v284_v33, %v288_v7 }
  0xf0   :  { %1722 = vmatpush2.bf16.msra.mxu1 %v2948_v36  ;;  %1748 = vmatprep.subr.bf16.mxu0 %v2959_v38  ;;  %v293_v36 = vrot.slane %v284_v33, %v292_v51 }
  0xf1   :  { %1723 = vmatprep.subr.bf16.mxu1 %v2956_v37 }
  0xf3   :  { %1749 = vmatpush1.bf16.msra.mxu0 %v2957_v40 }
  0xf4   :  { %1724 = vmatpush2.bf16.msra.mxu1 %v2954_v39  ;;  %1750 = vmatprep.subr.bf16.mxu0 %v2965_v42 }
  0xf5   :  { %1725 = vmatprep.subr.bf16.mxu1 %v2962_v41 }
  0xf7   :  { %1751 = vmatpush1.bf16.msra.mxu0 %v2963_v45 }
  0xf8   :  { %1726 = vmatpush2.bf16.msra.mxu1 %v2960_v43  ;;  %1752 = vmatprep.subr.bf16.mxu0 %v2971_v48 }
  0xf9   :  { %1727 = vmatprep.subr.bf16.mxu1 %v2968_v46 }
  0xfb   :  { %1753 = vmatpush1.bf16.msra.mxu0 %v2969_v50 }
  0xfc   :  { %1728 = vmatpush2.bf16.msra.mxu1 %v2966_v49  ;;  %2546 = vmatprep.subr.bf16.mxu0 %v2972_v52 }
  0xfd   :  { %2568 = vmatprep.subr.bf16.mxu1 %v2988_v9 }
  0xfe   :  { %1771 = vmatmul.mubr.bf16.vlgmr.msra.gmra.mxu0 %v3170_v44  ;;  %v2984_v44 = vld [vmem:[#allocation5 + $0x48] sm:$0xff]  }
  0xff   :  { %1730 = vmatmul.mubr.bf16.vlgmr.msra.gmra.mxu1 %v3176_v15  ;;  %2547 = vmatpush3.bf16.msra.mxu0 %v2973_v53  ;;  %v2983_v15 = vld [vmem:[#allocation5 + $0x10] sm:$0xff]  }
 0x100   :  { %2548 = vmatprep.subr.bf16.mxu0 %v2974_v54  ;;  %2569 = vmatpush3.bf16.msra.mxu1 %v2989_v10  ;;  %v3008_v10 = vld [vmem:[%s3230_s5 + $0x18] sm:$0xff]  }
 0x101   :  { %2570 = vmatprep.subr.bf16.mxu1 %v2990_v11 }
 0x103   :  { %2549 = vmatpush3.bf16.msra.mxu0 %v2975_v55 }
 0x104   :  { %2550 = vmatprep.subr.bf16.mxu0 %v2976_v56  ;;  %2571 = vmatpush3.bf16.msra.mxu1 %v2991_v12 }
 0x105   :  { %2572 = vmatprep.subr.bf16.mxu1 %v2992_v13 }
 0x107   :  { %2551 = vmatpush3.bf16.msra.mxu0 %v2977_v57 }
 0x108   :  { %2552 = vmatprep.subr.bf16.mxu0 %v2978_v58  ;;  %2573 = vmatpush3.bf16.msra.mxu1 %v2993_v14 }
 0x109   :  { %2574 = vmatprep.subr.bf16.mxu1 %v2994_v17 }
 0x10b   :  { %2553 = vmatpush3.bf16.msra.mxu0 %v2979_v59 }
 0x10c   :  { %2554 = vmatprep.subr.bf16.mxu0 %v2980_v60  ;;  %2575 = vmatpush3.bf16.msra.mxu1 %v2995_v18 }
 0x10d   :  { %2576 = vmatprep.subr.bf16.mxu1 %v2996_v19 }
 0x10f   :  { %2555 = vmatpush3.bf16.msra.mxu0 %v2981_v61 }
 0x110   :  { %2556 = vmatprep.subr.bf16.mxu0 %v2982_v62  ;;  %2577 = vmatpush3.bf16.msra.mxu1 %v2997_v20 }
 0x111   :  { %2578 = vmatprep.subr.bf16.mxu1 %v2998_v21 }
 0x113   :  { %2557 = vmatpush3.bf16.msra.mxu0 %v2983_v15  ;;  %v3004_v15 = vld [vmem:[%s3230_s5 + $0x38] sm:$0xff]  }
 0x114   :  { %2558 = vmatprep.subr.bf16.mxu0 %v2984_v44  ;;  %2579 = vmatpush3.bf16.msra.mxu1 %v2999_v22  ;;  %v3089_v44 = vmov 0.0  }
 0x115   :  { %2580 = vmatprep.subr.bf16.mxu1 %v3000_v25 }
 0x117   :  { %2559 = vmatpush3.bf16.msra.mxu0 %v2985_v47  ;;  %v3005_v47 = vld [vmem:[%s3230_s5 + $0x30] sm:$0xff]  }
 0x118   :  { %2560 = vmatprep.subr.bf16.mxu0 %v2986_v63  ;;  %2581 = vmatpush3.bf16.msra.mxu1 %v3001_v26  ;;  %v296_v63 = vsub.s32 2, %v287_v32 }
 0x119   :  { %2582 = vmatprep.subr.bf16.mxu1 %v3002_v29  ;;  %v3010_v29 = vld [vmem:[%s3230_s5 + $0x8] sm:$0xff]  }
 0x11b   :  { %2561 = vmatpush3.bf16.msra.mxu0 %v2987_v0  ;;  %v300_v0 = vsub.s32 3, %v287_v32 }
 0x11c   :  { %2583 = vmatpush3.bf16.msra.mxu1 %v3003_v30  ;;  %2599 = vmatprep.subr.bf16.mxu0 %v3089_v44  ;;  %v3011_v30 = vld [vmem:[%s3230_s5] sm:$0xff]  }
 0x11e   :  { %v1485_v1 = vpop.f32.mrf.mxu0 }
 0x11f   :  { %v1526_v6 = vpop.f32.mrf.mxu1  ;;  %v1486_v16 = vadd.f32 %v1485_v1, %v289_v34  ;;  %v3006_v1 = vld [vmem:[%s3230_s5 + $0x28] sm:$0xff]   ;;  %v2504_v34 = vld [vmem:[%s3229_s4] ss:$0 sm:$0xff]  ;;  %s3091_s4 = smov [#allocation7]  }
 0x120   :  { %v1487_v2 = vpop.f32.mrf.mxu0 }
 0x121   :  { %v1528_v3 = vpop.f32.mrf.mxu1  ;;  %v1488_v37 = vadd.f32 %v1487_v2, %v293_v36  ;;  %v1527_v38 = vadd.f32 %v1526_v6, %v1486_v16  ;;  %v297_v6 = vrot.slane %v284_v33, %v296_v63  ;;  %v301_v2 = vrot.slane %v284_v33, %v300_v0 }
 0x122   :  { %v1489_v4 = vpop.f32.mrf.mxu0 }
 0x123   :  { %v1530_v5 = vpop.f32.mrf.mxu1  ;;  %v1529_v40 = vadd.f32 %v1528_v3, %v1488_v37  ;;  %v3007_v3 = vld [vmem:[%s3230_s5 + $0x20] sm:$0xff]  }
 0x124   :  { %v1490_v35 = vpop.f32.mrf.mxu0 }
 0x125   :  { %v1531_v8 = vpop.f32.mrf.mxu1 }
 0x13f   :  { %v1608_v23 = vpop.f32.mrf.mxu1 }
 0x141   :  { %v1610_v24 = vpop.f32.mrf.mxu1 }
 0x143   :  { %v1612_v27 = vpop.f32.mrf.mxu1 }
 0x145   :  { %v1613_v28 = vpop.f32.mrf.mxu1 }
 0x146   :  { %v3009_v28 = vld [vmem:[%s3230_s5 + $0x10] sm:$0xff]  }
 0x15e   :  { %v1567_v39 = vpop.f32.mrf.mxu0 }
 0x15f   :  { %v1568_v41 = vadd.f32 %v1567_v39, %v1527_v38 }
 0x160   :  { %v1569_v42 = vpop.f32.mrf.mxu0 }
 0x161   :  { %v1609_v43 = vadd.f32 %v1608_v23, %v1568_v41  ;;  %v1570_v45 = vadd.f32 %v1569_v42, %v1529_v40 }
 0x162   :  { %v1571_v46 = vpop.f32.mrf.mxu0 }
 0x163   :  { %v1611_v48 = vadd.f32 %v1610_v24, %v1570_v45  ;;  %v1779_v49 = vmax.f32 %v1609_v43, 0.0  ;;  %v2537_v45 = vld [vmem:[%s3231_s6] ss:$0 sm:$0xff]  ;;  %s2263_s6 = sshll.u32 %s3091_s4, 4  ;;  %s2264_s6 = int_to_ptr.vmem [resolvable:$true] %s2263_s6 }
 0x164   :  { %v1572_v50 = vpop.f32.mrf.mxu0  ;;  %s3056_s15 = scalar_lea.vmem %s2264_s6, 128  ;;  %p3061_p11 = scmp.lt.s32.totalorder %s2264_s6, %s2264_s6 }
 0x165   :  { %v1780_v52 = vmax.f32 %v1611_v48, 0.0  ;;  %v1783_v54 = vpack.c.bf16 %v1779_v49, %v1779_v49  ;;  %p3057_p10 = scmp.ne.s32.totalorder %s2264_s6, %s3056_s15  ;;  %p3062_p12 = scmp.lt.s32.totalorder %s3056_s15, %s3056_s15 }
 0x167   :  { %v1784_v53 = vpack.c.bf16 %v1780_v52, %v1780_v52  ;;  %p3063_p13 = por %p3062_p12, %p3061_p11 }
 0x169   :  { %2082 = vmatprep.mubr.bf16.mxu0 %v1784_v53  ;;  %p3064_p0 = pnand %p3063_p13, %p3057_p10 }
 0x16a   :  { %2083 = vmatmul.mubr.bf16.vlgmr.msra.gmra.mxu0 %v1783_v54 }
 0x16b   :  { %2600 = vmatpush3.bf16.msra.mxu0 %v3004_v15  ;;  %2615 = vmatprep.mubr.msk.bf16.mxu0 %vm3090_vm0, %v3089_v44 }
 0x16c   :  { %2601 = vmatprep.subr.bf16.mxu0 %v3089_v44 }
 0x16f   :  { %2602 = vmatpush3.bf16.msra.mxu0 %v3005_v47 }
 0x170   :  { %2603 = vmatprep.subr.bf16.mxu0 %v3089_v44 }
 0x173   :  { %2604 = vmatpush3.bf16.msra.mxu0 %v3006_v1 }
 0x174   :  { %2605 = vmatprep.subr.bf16.mxu0 %v3089_v44 }
 0x177   :  { %2606 = vmatpush3.bf16.msra.mxu0 %v3007_v3 }
 0x178   :  { %2607 = vmatprep.subr.bf16.mxu0 %v3089_v44 }
 0x17b   :  { %2608 = vmatpush3.bf16.msra.mxu0 %v3008_v10 }
 0x17c   :  { %2609 = vmatprep.subr.bf16.mxu0 %v3089_v44 }
 0x17f   :  { %v1649_v55 = vpop.f32.mrf.mxu1  ;;  %2610 = vmatpush3.bf16.msra.mxu0 %v3009_v28 }
 0x180   :  { %v1650_v4 = vadd.f32 %v1649_v55, %v297_v6  ;;  %2611 = vmatprep.subr.bf16.mxu0 %v3089_v44 }
 0x181   :  { %v1651_v56 = vpop.f32.mrf.mxu1 }
 0x182   :  { %v1652_v5 = vadd.f32 %v1651_v56, %v301_v2 }
 0x183   :  { %v1653_v57 = vpop.f32.mrf.mxu1  ;;  %2612 = vmatpush3.bf16.msra.mxu0 %v3010_v29 }
 0x184   :  { %2613 = vmatprep.subr.bf16.mxu0 %v3089_v44 }
 0x185   :  { %v1654_v58 = vpop.f32.mrf.mxu1 }
 0x187   :  { %2614 = vmatpush3.bf16.msra.mxu0 %v3011_v30 }
 0x19e   :  { %v1690_v59 = vpop.f32.mrf.mxu0 }
 0x19f   :  { %v1691_v35 = vadd.f32 %v1690_v59, %v1650_v4 }
 0x1a0   :  { %v1692_v60 = vpop.f32.mrf.mxu0 }
 0x1a1   :  { %v1693_v11 = vadd.f32 %v1692_v60, %v1652_v5 }
 0x1a2   :  { %v1694_v61 = vpop.f32.mrf.mxu0 }
 0x1a4   :  { %v1695_v62 = vpop.f32.mrf.mxu0 }
 0x1be   :  { %v1772_v9 = vpop.f32.mrf.mxu0 }
 0x1bf   :  { %v1731_v8 = vpop.f32.mrf.mxu1 }
 0x1c0   :  { %v1732_v12 = vadd.f32 %v1731_v8, %v1691_v35  ;;  %v1774_v14 = vpop.f32.mrf.mxu0 }
 0x1c1   :  { %v1733_v13 = vpop.f32.mrf.mxu1 }
 0x1c2   :  { %v1773_v17 = vadd.f32 %v1772_v9, %v1732_v12  ;;  %v1734_v18 = vadd.f32 %v1733_v13, %v1693_v11  ;;  %v1776_v20 = vpop.f32.mrf.mxu0 }
 0x1c3   :  { %v1735_v19 = vpop.f32.mrf.mxu1 }
 0x1c4   :  { %v1775_v21 = vadd.f32 %v1774_v14, %v1734_v18  ;;  %v1781_v22 = vmax.f32 %v1773_v17, 0.0  ;;  %v1777_v24 = vpop.f32.mrf.mxu0 }
 0x1c5   :  { %v1736_v23 = vpop.f32.mrf.mxu1 }
 0x1c6   :  { %v1782_v25 = vmax.f32 %v1775_v21, 0.0  ;;  %v1785_v27 = vpack.c.bf16 %v1781_v22, %v1781_v22 }
 0x1c8   :  { %v1786_v26 = vpack.c.bf16 %v1782_v25, %v1782_v25 }
 0x1ca   :  { %2122 = vmatprep.mubr.bf16.mxu1 %v1786_v26 }
 0x1cb   :  { %2123 = vmatmul.mubr.bf16.vlgmr.msra.gmra.mxu1 %v1785_v27 }
 0x22a   :  { %v2562_v31 = vpop.f32.mrf.mxu0 }
 0x22c   :  { %v2563_v32 = vpop.f32.mrf.mxu0 }
 0x22d   :  { %v2564_v7 = vadd.f32 %v2563_v32, %v2562_v31 }
 0x22e   :  { %v2565_v33 = vpop.f32.mrf.mxu0 }
 0x22f   :  { %v2085_v37 = vadd.f32 %v2564_v7, %v2504_v34 }
 0x230   :  { %v2566_v51 = vpop.f32.mrf.mxu0 }
 0x28b   :  { %v2584_v36 = vpop.f32.mrf.mxu1 }
 0x28d   :  { %v2585_v16 = vpop.f32.mrf.mxu1 }
 0x28e   :  { %v2586_v38 = vadd.f32 %v2585_v16, %v2584_v36 }
 0x28f   :  { %v2587_v39 = vpop.f32.mrf.mxu1 }
 0x290   :  { %v2125_v40 = vadd.f32 %v2586_v38, %v2085_v37 }
 0x291   :  { %v2588_v41 = vpop.f32.mrf.mxu1 }
 0x292   :  { %v2130_v42 = vmax.f32 %v2125_v40, 0.0 }
 0x294   :  { %v2131_v43 = vpack.c.bf16 %v2130_v42, %v2130_v42 }
 0x296   :  { %2616 = vmatmul.mubr.bf16.vlgmr.msra.gmra.mxu0 %v2131_v43 }
 0x356   :  { %v2237_v46 = vpop.f32.mrf.mxu0 }
 0x357   :  { %v2238_v48 = vadd.f32 %v2537_v45, %v2237_v46 }
 0x358   :  { %v2617_v49 = vpop.f32.mrf.mxu0 }
 0x359   :  { %v2244_v50 = vsel %vm2243_vm1, %v2238_v48, -inf }
 0x35a   :  { %2245 = vmax.xlane.f32.xlu0 %v2244_v50  ;;  %v2240_v52 = vpop.f32.mrf.mxu0 }
 0x35c   :  { %v2618_v53 = vpop.f32.mrf.mxu0 }
 0x3e3   :  { %v2246_v54 = vpop.xlane.xlu0 %2245 }
 0x3e4   :  { %v2247_v55 = vsub.f32 %v2238_v48, %v2246_v54 }
 0x3e6   :  { %v2248_v56 = vmul.f32 1.442695, %v2247_v55 }
 0x3e8   :  { %3012 = vpow2.f32 %v2248_v56 }
 0x3f5   :  { %v3013_v57 = vpop.eup %3012 }
 0x3f6   :  { %v2250_v58 = vsel %vm2243_vm1, %v3013_v57, 0.0 }
 0x3f7   :  { %2251 = vadd.xlane.f32.xlu0 %v2250_v58 }
 0x480   :  { %v2252_v59 = vpop.xlane.xlu0 %2251 }
 0x481   :  { %3014 = vlog2.f32 %v2252_v59 }
 0x48e   :  { %v3015_v60 = vpop.eup %3014 }
 0x48f   :  { %v2254_v61 = vmul.f32 0.6931472, %v3015_v60 }
 0x491   :  { %v2255_v62 = vsub.f32 %v2247_v55, %v2254_v61 }
 0x493   :  { %2256 = vst.msk [vmem:[#allocation7] sm:$0xff] %vm2243_vm1, %v2255_v62 }
 0x494   :  { %3067 = shalt.err (!%p3064_p0)
}
 0x495   :  { %2266 = dma.vmem_to_hbm [thread:$0]  %s2264_s6, 128, %s3232_s7, [#allocation4]  }
 0x496   :  { %3080 = dma.done.wait [#allocation4], 128  }
 0x497   :  { %3081 = vsyncadd [#allocation4], 4294967168 }
 0x498   :  { %2270 = vsyncpa [#allocation3], 1 }
 0x499   :  { %2271 = vsyncpa [#allocation6], 1 }
 0x49a   :  { %2272 = vsyncpa [#allocation4], 1 }

</bundles_post_ra>
